<compile_context>
chip_gen: v7x
topology: tpu7x:2x2x1
jax: 0.10.0
libtpu: 0.0.40
codegen_flags: <defaults>
</compile_context>

<pallas_src>
import jax
import jax.numpy as jnp
from jax.experimental import pallas as pl
from jax.experimental.pallas import tpu as pltpu


def _round_up(x, m):
    return (x + m - 1) // m * m


# -------------------------------------------------------------------------------------
# Kernel
# -------------------------------------------------------------------------------------
def actor_critic_kernel(x_ref, w1_ref, b1_ref, w2_ref, b2_ref, w3_ref, b3_ref, out_ref):
    def mxu(a, w_ref):
        w = w_ref[...]
        # Operands cast to the weight dtype (bf16 fast path / f32); accumulate in f32.
        return jnp.dot(a.astype(w.dtype), w, preferred_element_type=jnp.float32)

    # Fused actor|critic hidden: lanes 0:H are the actor path, H:2H the critic path.
    # x_ref is already the MXU dtype (pre-cast in the wrapper) -> no in-kernel input cast.
    hg = jnp.tanh(mxu(x_ref[...], w1_ref) + b1_ref[...])
    hg = jnp.tanh(mxu(hg, w2_ref) + b2_ref[...])
    out3 = mxu(hg, w3_ref) + b3_ref[...]                 # [TM, A+1]: logits | value

    A = out3.shape[-1] - 1
    logits = out3[:, :A]
    value = out3[:, A:A + 1]

    # Softmax + log-softmax (logsumexp form) + entropy, all f32 in-kernel.
    m = jnp.max(logits, axis=-1, keepdims=True)
    shifted = logits - m
    e = jnp.exp(shifted)
    se = jnp.sum(e, axis=-1, keepdims=True)
    probs = e * pl.reciprocal(se, approx=False)          # exact -> probs sum to 1
    log_probs = shifted - jnp.log(se)                    # finite even if exp underflows
    entropy = -jnp.sum(probs * log_probs, axis=-1, keepdims=True)

    # Direct sub-slice stores into the narrow output slab (no wide temporary).
    out_ref[:, :A] = probs
    out_ref[:, A:2 * A] = log_probs
    out_ref[:, 2 * A:2 * A + 1] = value
    out_ref[:, 2 * A + 1:2 * A + 2] = entropy


# -------------------------------------------------------------------------------------
# One-time parameter packing (hoisted out of the hot RL loop)
# -------------------------------------------------------------------------------------
def pack_params(params, use_bf16=True):
    """Fuse actor+critic weights into 3 (block-diagonal) matrices, [in, out] layout.
    Call ONCE at init; the returned dict is what the per-step wrappers consume."""
    wa1, ba1 = params["wa1"], params["ba1"]
    wa2, ba2 = params["wa2"], params["ba2"]
    wa3, ba3 = params["wa3"], params["ba3"]
    wv1, bv1 = params["wv1"], params["bv1"]
    wv2, bv2 = params["wv2"], params["bv2"]
    wv3, bv3 = params["wv3"], params["bv3"]

    H = wa1.shape[1]
    A = wa3.shape[1]

    w1 = jnp.concatenate([wa1, wv1], axis=1)                                # [S, 2H]
    b1 = jnp.concatenate([ba1, bv1], axis=1)                                # [1, 2H]
    z = jnp.zeros((H, H), jnp.float32)
    w2 = jnp.block([[wa2, z], [z, wv2]])                                    # [2H, 2H]
    b2 = jnp.concatenate([ba2, bv2], axis=1)                                # [1, 2H]
    w3_top = jnp.concatenate([wa3, jnp.zeros((H, 1), jnp.float32)], axis=1)
    w3_bot = jnp.concatenate([jnp.zeros((H, A), jnp.float32), wv3], axis=1)
    w3 = jnp.concatenate([w3_top, w3_bot], axis=0)                          # [2H, A+1]
    b3 = jnp.concatenate([ba3, bv3], axis=1)                                # [1, A+1]

    wdt = jnp.bfloat16 if use_bf16 else jnp.float32
    return {
        "w1": jnp.asarray(w1, wdt), "b1": jnp.asarray(b1, jnp.float32),
        "w2": jnp.asarray(w2, wdt), "b2": jnp.asarray(b2, jnp.float32),
        "w3": jnp.asarray(w3, wdt), "b3": jnp.asarray(b3, jnp.float32),
        "A": A, "use_bf16": use_bf16,
    }


# -------------------------------------------------------------------------------------
# Wrappers
# -------------------------------------------------------------------------------------
_TM_CAP = 1024       # largest batch tile; VMEM at 1024 rows is a few MiB, far under limits
_TWO_STEP_MIN = 256  # with >= this many rows, keep a parallel grid of >=2 (v7x: 2 TCs)


def actor_critic_heads(state, packed):
    """Runs the fused actor+critic network. Returns (probs, log_probs, value, entropy)."""
    w1, b1 = packed["w1"], packed["b1"]
    w2, b2 = packed["w2"], packed["b2"]
    w3, b3 = packed["w3"], packed["b3"]
    A = packed["A"]
    out_w = 2 * A + 2                       # probs | log_probs | value | entropy

    B, S = state.shape
    # Pre-cast the input once in the wrapper (halves the input DMA when bf16).
    x = state.astype(w1.dtype)

    # Tight batch padding (<= 7 dead rows) + tile choice.
    B8 = _round_up(B, 8)
    n_steps = max(1, pl.cdiv(B8, _TM_CAP))
    if n_steps == 1 and B8 >= _TWO_STEP_MIN:
        n_steps = 2                          # v7x: shard the parallel axis across both TCs
    TM = _round_up(pl.cdiv(B8, n_steps), 8)
    grid = pl.cdiv(B8, TM)
    B_pad = grid * TM
    if B_pad != B:
        x = jnp.pad(x, ((0, B_pad - B), (0, 0)))

    def resident(a):  # whole array, constant block index -> loaded once, stays in VMEM
        return pl.BlockSpec(a.shape, lambda i: (0, 0))

    out = pl.pallas_call(
        actor_critic_kernel,
        out_shape=jax.ShapeDtypeStruct((B_pad, out_w), jnp.float32),
        grid=(grid,),
        in_specs=[
            pl.BlockSpec((TM, S), lambda i: (i, 0)),
            resident(w1), resident(b1),
            resident(w2), resident(b2),
            resident(w3), resident(b3),
        ],
        out_specs=pl.BlockSpec((TM, out_w), lambda i: (i, 0)),
        compiler_params=pltpu.CompilerParams(dimension_semantics=("parallel",)),
    )(x, w1, b1, w2, b2, w3, b3)

    out = out[:B]
    probs = out[:, :A]
    log_probs = out[:, A:2 * A]
    value = out[:, 2 * A:2 * A + 1]
    entropy = out[:, 2 * A + 1:2 * A + 2]
    return probs, log_probs, value, entropy


def actor_critic_forward(state, packed):
    """Mirror of action_layer(state), value_layer(state): (action_probs [B,A], value [B,1])."""
    probs, _, value, _ = actor_critic_heads(state, packed)
    return probs, value


def evaluate(state, action, packed):
    """Mirror of ActorCritic.evaluate: (action_logprobs, squeezed state_value, entropy)."""
    # TODO(synk): `action` could be scalar-prefetched and gathered in-kernel; the
    # post-kernel take_along_axis on a [B, A] array is a minor cost for this tiny head.
    _, log_probs, value, entropy = actor_critic_heads(state, packed)
    idx = action.astype(jnp.int32)[:, None]
    action_logprobs = jnp.take_along_axis(log_probs, idx, axis=-1)[:, 0]
    return action_logprobs, value[:, 0], entropy[:, 0]


# TODO(synk): ActorCritic.act()'s Categorical sampling + Memory bookkeeping are host-side /
# stateful; action sampling would use jax.random.categorical outside the kernel.


def init_params(key, state_dim, action_dim, n_latent_var):
    """Deterministic synthetic init (uniform, like PyTorch's default Linear init).
    Weights are stored [in, out] (transposed vs nn.Linear's [out, in])."""
    def linear(k, fan_in, fan_out):
        kw, kb = jax.random.split(k)
        bound = 1.0 / jnp.sqrt(fan_in)
        w = jax.random.uniform(kw, (fan_in, fan_out), jnp.float32, -bound, bound)
        b = jax.random.uniform(kb, (1, fan_out), jnp.float32, -bound, bound)
        return w, b

    keys = jax.random.split(key, 6)
    wa1, ba1 = linear(keys[0], state_dim, n_latent_var)
    wa2, ba2 = linear(keys[1], n_latent_var, n_latent_var)
    wa3, ba3 = linear(keys[2], n_latent_var, action_dim)
    wv1, bv1 = linear(keys[3], state_dim, n_latent_var)
    wv2, bv2 = linear(keys[4], n_latent_var, n_latent_var)
    wv3, bv3 = linear(keys[5], n_latent_var, 1)
    return dict(
        wa1=wa1, ba1=ba1, wa2=wa2, ba2=ba2, wa3=wa3, ba3=ba3,
        wv1=wv1, bv1=bv1, wv2=wv2, bv2=bv2, wv3=wv3, bv3=bv3,
    )


if __name__ == "__main__":
    # Lunar Lander: state_dim=8, action_dim=4, hidden=64.
    state_dim, action_dim, n_latent_var = 8, 4, 64

    key = jax.random.PRNGKey(0)
    k_params, k_state, k_action, k_state2, k_action2 = jax.random.split(key, 5)
    params = init_params(k_params, state_dim, action_dim, n_latent_var)

    # One-time packing (hoisted out of the hot path).
    packed_f32 = pack_params(params, use_bf16=False)
    packed_bf16 = pack_params(params, use_bf16=True)

    # Pure-JAX reference of the original (unfused) module.
    def ref_forward(x, p):
        h = jnp.tanh(x @ p["wa1"] + p["ba1"])
        h = jnp.tanh(h @ p["wa2"] + p["ba2"])
        logits = h @ p["wa3"] + p["ba3"]
        probs = jax.nn.softmax(logits, axis=-1)
        logp = jax.nn.log_softmax(logits, axis=-1)
        g = jnp.tanh(x @ p["wv1"] + p["bv1"])
        g = jnp.tanh(g @ p["wv2"] + p["bv2"])
        v = g @ p["wv3"] + p["bv3"]
        return probs, v, logp

    # ---- small batch, f32 MXU operands: structural correctness check ----------------
    B1 = 8
    state1 = jax.random.normal(k_state, (B1, state_dim), jnp.float32)
    action1 = jax.random.randint(k_action, (B1,), 0, action_dim)

    probs_k, value_k = actor_critic_forward(state1, packed_f32)
    probs_r, value_r, logp_r = ref_forward(state1, params)
    assert jnp.allclose(probs_k, probs_r, atol=2e-2, rtol=2e-2)
    assert jnp.allclose(value_k, value_r, atol=2e-2, rtol=2e-2)
    assert jnp.allclose(jnp.sum(probs_k, axis=-1), 1.0, atol=2e-3)

    lp1, v1, ent1 = evaluate(state1, action1, packed_f32)
    lp1_r = jnp.take_along_axis(logp_r, action1[:, None], axis=-1)[:, 0]
    ent1_r = -jnp.sum(probs_r * logp_r, axis=-1)
    assert jnp.allclose(lp1, lp1_r, atol=2e-2, rtol=2e-2)
    assert jnp.allclose(ent1, ent1_r, atol=2e-2, rtol=2e-2)
    assert jnp.allclose(v1, value_r[:, 0], atol=2e-2, rtol=2e-2)

    # ---- larger batch, bf16 MXU operands: exercises grid split + tight padding ------
    B2 = 300  # -> B8=304, grid=(2,), TM=152, only 4 padded rows
    state2 = jax.random.normal(k_state2, (B2, state_dim), jnp.float32)
    action2 = jax.random.randint(k_action2, (B2,), 0, action_dim)

    lp2, v2, ent2 = evaluate(state2, action2, packed_bf16)
    jax.block_until_ready((lp2, v2, ent2))

    probs2_r, value2_r, logp2_r = ref_forward(state2, params)
    lp2_r = jnp.take_along_axis(logp2_r, action2[:, None], axis=-1)[:, 0]
    ent2_r = -jnp.sum(probs2_r * logp2_r, axis=-1)
    assert jnp.allclose(lp2, lp2_r, atol=7e-2, rtol=7e-2)
    assert jnp.allclose(v2, value2_r[:, 0], atol=7e-2, rtol=7e-2)
    assert jnp.allclose(ent2, ent2_r, atol=7e-2, rtol=7e-2)
    assert bool(jnp.all(jnp.isfinite(lp2))) and bool(jnp.all(jnp.isfinite(ent2)))

    print("KERNEL_OK")
</pallas_src>

<mosaic_0001>
module attributes {stable_mosaic.version = 11 : i64} {
  func.func @actor_critic_kernel(%arg0: i32, %arg1: memref<8x8xf32, #tpu.memory_space<vmem>>, %arg2: memref<8x128xf32, #tpu.memory_space<vmem>>, %arg3: memref<1x128xf32, #tpu.memory_space<vmem>>, %arg4: memref<128x128xf32, #tpu.memory_space<vmem>>, %arg5: memref<1x128xf32, #tpu.memory_space<vmem>>, %arg6: memref<128x5xf32, #tpu.memory_space<vmem>>, %arg7: memref<1x5xf32, #tpu.memory_space<vmem>>, %arg8: memref<8x10xf32, #tpu.memory_space<vmem>>) attributes {dimension_semantics = [#tpu.dimension_semantics<parallel>], iteration_bounds = array<i64: 1>, scalar_prefetch = 0 : i64, scratch_operands = 0 : i64, tpu.core_type = #tpu.core_type<tc>, window_params = [{transform_indices = @transform_0, window_bounds = array<i64: 8, 8>}, {pipeline_mode = #tpu.pipeline_mode<synchronous>, transform_indices = @transform_1, window_bounds = array<i64: 8, 128>}, {pipeline_mode = #tpu.pipeline_mode<synchronous>, transform_indices = @transform_2, window_bounds = array<i64: 1, 128>}, {pipeline_mode = #tpu.pipeline_mode<synchronous>, transform_indices = @transform_3, window_bounds = array<i64: 128, 128>}, {pipeline_mode = #tpu.pipeline_mode<synchronous>, transform_indices = @transform_4, window_bounds = array<i64: 1, 128>}, {pipeline_mode = #tpu.pipeline_mode<synchronous>, transform_indices = @transform_5, window_bounds = array<i64: 128, 5>}, {pipeline_mode = #tpu.pipeline_mode<synchronous>, transform_indices = @transform_6, window_bounds = array<i64: 1, 5>}, {transform_indices = @transform_7, window_bounds = array<i64: 8, 10>}]} {
    %c0 = arith.constant 0 : index
    %c0_0 = arith.constant 0 : index
    %0 = vector.load %arg1[%c0, %c0_0] : memref<8x8xf32, #tpu.memory_space<vmem>>, vector<8x8xf32>
    %c0_1 = arith.constant 0 : index
    %c0_2 = arith.constant 0 : index
    %1 = vector.load %arg2[%c0_1, %c0_2] : memref<8x128xf32, #tpu.memory_space<vmem>>, vector<8x128xf32>
    %cst = arith.constant dense<0.000000e+00> : vector<8x128xf32>
    %2 = tpu.matmul %0, %1, %cst {dimension_numbers = #tpu.dot_dimension_numbers<[1], [0], [0], [1], [0, 0, 1, 1], [], []>} : vector<8x8xf32>, vector<8x128xf32>, vector<8x128xf32> -> vector<8x128xf32>
    %c0_3 = arith.constant 0 : index
    %c0_4 = arith.constant 0 : index
    %3 = vector.load %arg3[%c0_3, %c0_4] : memref<1x128xf32, #tpu.memory_space<vmem>>, vector<1x128xf32>
    %4 = vector.broadcast %3 : vector<1x128xf32> to vector<8x128xf32>
    %5 = arith.addf %2, %4 : vector<8x128xf32>
    %6 = math.tanh %5 : vector<8x128xf32>
    %c0_5 = arith.constant 0 : index
    %c0_6 = arith.constant 0 : index
    %7 = vector.load %arg4[%c0_5, %c0_6] : memref<128x128xf32, #tpu.memory_space<vmem>>, vector<128x128xf32>
    %cst_7 = arith.constant dense<0.000000e+00> : vector<8x128xf32>
    %8 = tpu.matmul %6, %7, %cst_7 {dimension_numbers = #tpu.dot_dimension_numbers<[1], [0], [0], [1], [0, 0, 1, 1], [], []>} : vector<8x128xf32>, vector<128x128xf32>, vector<8x128xf32> -> vector<8x128xf32>
    %c0_8 = arith.constant 0 : index
    %c0_9 = arith.constant 0 : index
    %9 = vector.load %arg5[%c0_8, %c0_9] : memref<1x128xf32, #tpu.memory_space<vmem>>, vector<1x128xf32>
    %10 = vector.broadcast %9 : vector<1x128xf32> to vector<8x128xf32>
    %11 = arith.addf %8, %10 : vector<8x128xf32>
    %12 = math.tanh %11 : vector<8x128xf32>
    %c0_10 = arith.constant 0 : index
    %c0_11 = arith.constant 0 : index
    %13 = vector.load %arg6[%c0_10, %c0_11] : memref<128x5xf32, #tpu.memory_space<vmem>>, vector<128x5xf32>
    %cst_12 = arith.constant dense<0.000000e+00> : vector<8x5xf32>
    %14 = tpu.matmul %12, %13, %cst_12 {dimension_numbers = #tpu.dot_dimension_numbers<[1], [0], [0], [1], [0, 0, 1, 1], [], []>} : vector<8x128xf32>, vector<128x5xf32>, vector<8x5xf32> -> vector<8x5xf32>
    %c0_13 = arith.constant 0 : index
    %c0_14 = arith.constant 0 : index
    %15 = vector.load %arg7[%c0_13, %c0_14] : memref<1x5xf32, #tpu.memory_space<vmem>>, vector<1x5xf32>
    %16 = vector.broadcast %15 : vector<1x5xf32> to vector<8x5xf32>
    %17 = arith.addf %14, %16 : vector<8x5xf32>
    %18 = vector.extract_strided_slice %17 {offsets = [0, 0], sizes = [8, 4], strides = [1, 1]} : vector<8x5xf32> to vector<8x4xf32>
    %19 = vector.extract_strided_slice %17 {offsets = [0, 4], sizes = [8, 1], strides = [1, 1]} : vector<8x5xf32> to vector<8x1xf32>
    %cst_15 = arith.constant dense<0xFF800000> : vector<8xf32>
    %20 = vector.multi_reduction <maximumf>, %18, %cst_15 [1] : vector<8x4xf32> to vector<8xf32>
    %21 = vector.shape_cast %20 : vector<8xf32> to vector<8x1xf32>
    %22 = vector.broadcast %21 : vector<8x1xf32> to vector<8x4xf32>
    %23 = arith.subf %18, %22 : vector<8x4xf32>
    %24 = math.exp %23 : vector<8x4xf32>
    %cst_16 = arith.constant dense<0.000000e+00> : vector<8xf32>
    %25 = vector.multi_reduction <add>, %24, %cst_16 [1] : vector<8x4xf32> to vector<8xf32>
    %26 = vector.shape_cast %25 : vector<8xf32> to vector<8x1xf32>
    %27 = tpu.reciprocal %26 : vector<8x1xf32> -> vector<8x1xf32>
    %28 = vector.broadcast %27 : vector<8x1xf32> to vector<8x4xf32>
    %29 = arith.mulf %24, %28 : vector<8x4xf32>
    %30 = math.log %26 : vector<8x1xf32>
    %31 = vector.broadcast %30 : vector<8x1xf32> to vector<8x4xf32>
    %32 = arith.subf %23, %31 : vector<8x4xf32>
    %33 = arith.mulf %29, %32 : vector<8x4xf32>
    %cst_17 = arith.constant dense<0.000000e+00> : vector<8xf32>
    %34 = vector.multi_reduction <add>, %33, %cst_17 [1] : vector<8x4xf32> to vector<8xf32>
    %35 = vector.shape_cast %34 : vector<8xf32> to vector<8x1xf32>
    %cst_18 = arith.constant 0.000000e+00 : f32
    %36 = vector.broadcast %cst_18 : f32 to vector<8x1xf32>
    %37 = arith.subf %36, %35 : vector<8x1xf32>
    %c0_19 = arith.constant 0 : index
    %c0_20 = arith.constant 0 : index
    %38 = vector.load %arg8[%c0_19, %c0_20] : memref<8x10xf32, #tpu.memory_space<vmem>>, vector<8x4xf32>
    tpu.vector_store %arg8[%c0_19, %c0_20], %29 {strides = array<i32>} : memref<8x10xf32, #tpu.memory_space<vmem>>, vector<8x4xf32>,
    %c0_21 = arith.constant 0 : index
    %c4 = arith.constant 4 : index
    %39 = vector.load %arg8[%c0_21, %c4] : memref<8x10xf32, #tpu.memory_space<vmem>>, vector<8x4xf32>
    tpu.vector_store %arg8[%c0_21, %c4], %32 {strides = array<i32>} : memref<8x10xf32, #tpu.memory_space<vmem>>, vector<8x4xf32>,
    %c0_22 = arith.constant 0 : index
    %c8 = arith.constant 8 : index
    %40 = vector.load %arg8[%c0_22, %c8] : memref<8x10xf32, #tpu.memory_space<vmem>>, vector<8x1xf32>
    tpu.vector_store %arg8[%c0_22, %c8], %19 {strides = array<i32>} : memref<8x10xf32, #tpu.memory_space<vmem>>, vector<8x1xf32>,
    %c0_23 = arith.constant 0 : index
    %c9 = arith.constant 9 : index
    %41 = vector.load %arg8[%c0_23, %c9] : memref<8x10xf32, #tpu.memory_space<vmem>>, vector<8x1xf32>
    tpu.vector_store %arg8[%c0_23, %c9], %37 {strides = array<i32>} : memref<8x10xf32, #tpu.memory_space<vmem>>, vector<8x1xf32>,
    return
  }
  func.func @transform_0(%arg0: i32) -> (i32, i32) {
    %c0_i32 = arith.constant 0 : i32
    %c0_i32_0 = arith.constant 0 : i32
    return %arg0, %c0_i32 : i32, i32
  }
  func.func @transform_1(%arg0: i32) -> (i32, i32) {
    %c0_i32 = arith.constant 0 : i32
    %c0_i32_0 = arith.constant 0 : i32
    %c0_i32_1 = arith.constant 0 : i32
    return %c0_i32, %c0_i32_0 : i32, i32
  }
  func.func @transform_2(%arg0: i32) -> (i32, i32) {
    %c0_i32 = arith.constant 0 : i32
    %c0_i32_0 = arith.constant 0 : i32
    %c0_i32_1 = arith.constant 0 : i32
    return %c0_i32, %c0_i32_0 : i32, i32
  }
  func.func @transform_3(%arg0: i32) -> (i32, i32) {
    %c0_i32 = arith.constant 0 : i32
    %c0_i32_0 = arith.constant 0 : i32
    %c0_i32_1 = arith.constant 0 : i32
    return %c0_i32, %c0_i32_0 : i32, i32
  }
  func.func @transform_4(%arg0: i32) -> (i32, i32) {
    %c0_i32 = arith.constant 0 : i32
    %c0_i32_0 = arith.constant 0 : i32
    %c0_i32_1 = arith.constant 0 : i32
    return %c0_i32, %c0_i32_0 : i32, i32
  }
  func.func @transform_5(%arg0: i32) -> (i32, i32) {
    %c0_i32 = arith.constant 0 : i32
    %c0_i32_0 = arith.constant 0 : i32
    %c0_i32_1 = arith.constant 0 : i32
    return %c0_i32, %c0_i32_0 : i32, i32
  }
  func.func @transform_6(%arg0: i32) -> (i32, i32) {
    %c0_i32 = arith.constant 0 : i32
    %c0_i32_0 = arith.constant 0 : i32
    %c0_i32_1 = arith.constant 0 : i32
    return %c0_i32, %c0_i32_0 : i32, i32
  }
  func.func @transform_7(%arg0: i32) -> (i32, i32) {
    %c0_i32 = arith.constant 0 : i32
    %c0_i32_0 = arith.constant 0 : i32
    return %arg0, %c0_i32 : i32, i32
  }
}

</mosaic_0001>

<bundles_post_ra>
// kernel: tpu_custom_call.1
= control target key start
LH: loop header
LB: loop body
LE: loop exit
PB: predicated region body
PF: predicated region fallthrough
CT: control target
= control target key end

     0   :  { %12 = vsyncpa [#allocation3], 0  ;;  %s788_s0 = inlined_call_operand.vmem [shape: f32[8,8], index: 0, kind: input, shape index: {}]   ;;  %s789_s1 = inlined_call_operand.hbm [shape: f32[8,128], index: 1, kind: input, shape index: {}]   ;;  %s790_s2 = inlined_call_operand.vmem [shape: f32[1,128], index: 2, kind: input, shape index: {}]   ;;  %s791_s3 = inlined_call_operand.vmem [shape: f32[128,128], index: 3, kind: input, shape index: {}]   ;;  %s792_s4 = inlined_call_operand.vmem [shape: f32[1,128], index: 4, kind: input, shape index: {}]   ;;  %s793_s5 = inlined_call_operand.vmem [shape: f32[128,5], index: 5, kind: input, shape index: {}]   ;;  %s794_s6 = inlined_call_operand.vmem [shape: f32[1,5], index: 6, kind: input, shape index: {}]   ;;  %s795_s7 = inlined_call_operand.hbm [shape: f32[8,10], index: 7, kind: output, shape index: {}]  }
   0x1   :  { %13 = vsyncpa [#allocation4], 0  ;;  %s587_s24 = smov [#allocation2]   ;;  %s539_s28 = scalar_lea.hbm %s789_s1, 128 }
   0x2   :  { %s22_s25 = sshll.u32 %s587_s24, 4  ;;  %p540_p0 = scmp.ne.s32.totalorder %s789_s1, %s539_s28  ;;  %s23_s25 = int_to_ptr.vmem [resolvable:$true] %s22_s25 }
   0x3   :  { %p543_p1 = scmp.lt.u32.totalorder %s539_s28, %s789_s1 }
   0x5   :  { %p545_p2 = pnand %p543_p1, %p540_p0 }
   0x7   :  { %548 = shalt.err (!%p545_p2)
}
   0x8   :  { %s549_s10 = scalar_lea.vmem %s23_s25, 128  ;;  %p554_p4 = scmp.lt.s32.totalorder %s23_s25, %s23_s25 }
   0x9   :  { %p550_p3 = scmp.ne.s32.totalorder %s23_s25, %s549_s10  ;;  %p555_p5 = scmp.lt.s32.totalorder %s549_s10, %s549_s10 }
   0xb   :  { %p556_p6 = por %p555_p5, %p554_p4 }
   0xd   :  { %p557_p7 = pnand %p556_p6, %p550_p3 }
   0xf   :  { %560 = shalt.err (!%p557_p7)
}
  0x10   :  { %25 = dma.hbm_to_vmem [thread:$0]  %s789_s1, 128, %s23_s25, [#allocation3]  }
  0x11   :  { %583 = dma.done.wait [#allocation3], 128  }
  0x12   :  { %584 = vsyncadd [#allocation3], 4294967168  ;;  %v588_v0 = vmov 0.0   ;;  %vm589_vm0 = vmmov 0   ;;  %v590_v1 = vmov 0.0|0.0   ;;  %vm48_vm1 = vcmask 64512  }
  0x13   :  { %400 = vmatprep.subr.mxu0 %v588_v0  ;;  %402 = vmatprep.mubr.msk.f32.mxu0 %vm589_vm0, %v588_v0  ;;  %v40_v2 = vld [vmem:[#allocation2] sm:$0xff]  ;;  %v124_v5 = vld [vmem:[%s791_s3 + $0x8] sm:$0xff]  ;;  %v125_v6 = vld [vmem:[%s791_s3 + $0x10] sm:$0xff]  ;;  %vm310_vm2 = vcmask 31744   ;;  %vm335_vm3 = vcmask 64544   ;;  %vm341_vm4 = vcmask 72768  }
  0x14   :  { %475 = vmatprep.subr.bf16.mxu1 %v590_v1  ;;  %437 = vmatprep.mubr.msk.f32.mxu1 %vm589_vm0, %v588_v0  ;;  %v39_v3 = vld [vmem:[%s788_s0] sm:$0xff]  ;;  %v126_v7 = vld [vmem:[%s791_s3 + $0x18] sm:$0xff]  ;;  %v128_v11 = vld [vmem:[%s791_s3 + $0x28] sm:$0xff]  ;;  %vm343_vm5 = vcmask 80968  }
  0x15   :  { %v123_v4 = vld [vmem:[%s791_s3] sm:$0xff]  ;;  %401 = vmatpush3.msra.mxu0 %v40_v2  ;;  %v479_v9 = vpack.c.bf16 %v126_v7, %v125_v6  ;;  %v129_v13 = vld [vmem:[%s791_s3 + $0x30] sm:$0xff]  ;;  %v130_v14 = vld [vmem:[%s791_s3 + $0x38] sm:$0xff] }
  0x16   :  { %403 = vmatmul.mubr.msk.f32.vlgmr.msra.gmra.mrb[0].mxu0 %vm48_vm1, %v39_v3  ;;  %v476_v8 = vpack.c.bf16 %v124_v5, %v123_v4  ;;  %499 = vmatprep.subr.bf16.mxu0 %v590_v1  ;;  %v127_v10 = vld [vmem:[%s791_s3 + $0x20] sm:$0xff]  ;;  %v485_v15 = vpack.c.bf16 %v130_v14, %v129_v13  ;;  %v132_v17 = vld [vmem:[%s791_s3 + $0x48] sm:$0xff]  ;;  %v133_v19 = vld [vmem:[%s791_s3 + $0x50] sm:$0xff] }
  0x17   :  { %472 = vmatprep.mubr.msk.f32.mxu0 %vm589_vm0, %v588_v0  ;;  %v482_v12 = vpack.c.bf16 %v128_v11, %v127_v10  ;;  %v131_v16 = vld [vmem:[%s791_s3 + $0x40] sm:$0xff]  ;;  %v134_v20 = vld [vmem:[%s791_s3 + $0x58] sm:$0xff]  ;;  %v136_v23 = vld [vmem:[%s791_s3 + $0x68] sm:$0xff] }
  0x18   :  { %477 = vmatpush3.bf16.msra.mxu1 %v476_v8  ;;  %v488_v18 = vpack.c.bf16 %v132_v17, %v131_v16  ;;  %v491_v21 = vpack.c.bf16 %v134_v20, %v133_v19  ;;  %v135_v22 = vld [vmem:[%s791_s3 + $0x60] sm:$0xff]  ;;  %v137_v25 = vld [vmem:[%s791_s3 + $0x70] sm:$0xff]  ;;  %v138_v26 = vld [vmem:[%s791_s3 + $0x78] sm:$0xff] }
  0x19   :  { %478 = vmatprep.subr.bf16.mxu1 %v590_v1  ;;  %v494_v24 = vpack.c.bf16 %v136_v23, %v135_v22  ;;  %v497_v27 = vpack.c.bf16 %v138_v26, %v137_v25  ;;  %v217_v28 = vld [vmem:[%s793_s5] sm:$0xff]  ;;  %v218_v29 = vld [vmem:[%s793_s5 + $0x8] sm:$0xff]  ;;  %v219_v30 = vld [vmem:[%s793_s5 + $0x10] sm:$0xff] }
  0x1a   :  { %v500_v31 = vpack.c.bf16 %v218_v29, %v217_v28  ;;  %v220_v32 = vld [vmem:[%s793_s5 + $0x18] sm:$0xff]  ;;  %v221_v34 = vld [vmem:[%s793_s5 + $0x20] sm:$0xff]  ;;  %v222_v35 = vld [vmem:[%s793_s5 + $0x28] sm:$0xff] }
  0x1b   :  { %v503_v33 = vpack.c.bf16 %v220_v32, %v219_v30  ;;  %v506_v36 = vpack.c.bf16 %v222_v35, %v221_v34  ;;  %v223_v37 = vld [vmem:[%s793_s5 + $0x30] sm:$0xff]  ;;  %v224_v38 = vld [vmem:[%s793_s5 + $0x38] sm:$0xff]  ;;  %v225_v40 = vld [vmem:[%s793_s5 + $0x40] sm:$0xff] }
  0x1c   :  { %480 = vmatpush3.bf16.msra.mxu1 %v479_v9  ;;  %501 = vmatpush3.bf16.msra.mxu0 %v500_v31  ;;  %v509_v39 = vpack.c.bf16 %v224_v38, %v223_v37  ;;  %v226_v41 = vld [vmem:[%s793_s5 + $0x48] sm:$0xff]  ;;  %v360_v43 = vld [vmem:[%s790_s2] ss:$0 sm:$0xff]  ;;  %v227_v48 = vld [vmem:[%s793_s5 + $0x50] sm:$0xff] }
  0x1d   :  { %481 = vmatprep.subr.bf16.mxu1 %v590_v1  ;;  %502 = vmatprep.subr.bf16.mxu0 %v590_v1  ;;  %v512_v42 = vpack.c.bf16 %v226_v41, %v225_v40  ;;  %v228_v49 = vld [vmem:[%s793_s5 + $0x58] sm:$0xff]  ;;  %v229_v51 = vld [vmem:[%s793_s5 + $0x60] sm:$0xff]  ;;  %v230_v52 = vld [vmem:[%s793_s5 + $0x68] sm:$0xff] }
  0x1e   :  { %v515_v50 = vpack.c.bf16 %v228_v49, %v227_v48  ;;  %v518_v53 = vpack.c.bf16 %v230_v52, %v229_v51  ;;  %v231_v54 = vld [vmem:[%s793_s5 + $0x70] sm:$0xff]  ;;  %v232_v55 = vld [vmem:[%s793_s5 + $0x78] sm:$0xff]  ;;  %v362_v57 = vld [vmem:[%s792_s4] ss:$0 sm:$0xff]  ;;  %s591_s4 = smov 4   ;;  %s592_s5 = smov [#allocation5]  }
  0x1f   :  { %v521_v56 = vpack.c.bf16 %v232_v55, %v231_v54  ;;  %v363_v62 = vld [vmem:[%s794_s6] ss:$0 sm:$0xff]  ;;  %s351_s6 = sshll.u32 %s592_s5, 4  ;;  %s352_s6 = int_to_ptr.vmem [resolvable:$true] %s351_s6 }
  0x20   :  { %483 = vmatpush3.bf16.msra.mxu1 %v482_v12  ;;  %504 = vmatpush3.bf16.msra.mxu0 %v503_v33  ;;  %s561_s30 = scalar_lea.vmem %s352_s6, 128  ;;  %p566_p9 = scmp.lt.s32.totalorder %s352_s6, %s352_s6 }
  0x21   :  { %484 = vmatprep.subr.bf16.mxu1 %v590_v1  ;;  %505 = vmatprep.subr.bf16.mxu0 %v590_v1  ;;  %p562_p8 = scmp.ne.s32.totalorder %s352_s6, %s561_s30  ;;  %p567_p10 = scmp.lt.s32.totalorder %s561_s30, %s561_s30 }
  0x23   :  { %p568_p11 = por %p567_p10, %p566_p9 }
  0x24   :  { %486 = vmatpush3.bf16.msra.mxu1 %v485_v15  ;;  %507 = vmatpush3.bf16.msra.mxu0 %v506_v36 }
  0x25   :  { %487 = vmatprep.subr.bf16.mxu1 %v590_v1  ;;  %508 = vmatprep.subr.bf16.mxu0 %v590_v1  ;;  %p569_p12 = pnand %p568_p11, %p562_p8 }
  0x28   :  { %489 = vmatpush3.bf16.msra.mxu1 %v488_v18  ;;  %510 = vmatpush3.bf16.msra.mxu0 %v509_v39 }
  0x29   :  { %490 = vmatprep.subr.bf16.mxu1 %v590_v1  ;;  %511 = vmatprep.subr.bf16.mxu0 %v590_v1 }
  0x2c   :  { %492 = vmatpush3.bf16.msra.mxu1 %v491_v21  ;;  %513 = vmatpush3.bf16.msra.mxu0 %v512_v42 }
  0x2d   :  { %493 = vmatprep.subr.bf16.mxu1 %v590_v1  ;;  %514 = vmatprep.subr.bf16.mxu0 %v590_v1 }
  0x30   :  { %495 = vmatpush3.bf16.msra.mxu1 %v494_v24  ;;  %516 = vmatpush3.bf16.msra.mxu0 %v515_v50 }
  0x31   :  { %496 = vmatprep.subr.bf16.mxu1 %v590_v1  ;;  %517 = vmatprep.subr.bf16.mxu0 %v590_v1 }
  0x34   :  { %498 = vmatpush3.bf16.msra.mxu1 %v497_v27  ;;  %519 = vmatpush3.bf16.msra.mxu0 %v518_v53 }
  0x35   :  { %520 = vmatprep.subr.bf16.mxu0 %v590_v1 }
  0x38   :  { %522 = vmatpush3.bf16.msra.mxu0 %v521_v56 }
  0xe9   :  { %v118_v44 = vpop.f32.mrb[0].mxu0 }
  0xea   :  { %v119_v45 = vadd.f32 %v360_v43, %v118_v44  ;;  %v404_v46 = vpop.f32.mrb[1].mxu0 }
  0xec   :  { %529 = vtanh.f32 %v119_v45 }
  0xf6   :  { %v530_v47 = vpop.eup %529 }
  0xf7   :  { %438 = vmatmul.mubr.f32.vlgmr.msra.gmra.mrb[0].mxu1 %v530_v47 }
 0x1ca   :  { %v212_v58 = vpop.f32.mrb[0].mxu1 }
 0x1cb   :  { %v213_v59 = vadd.f32 %v362_v57, %v212_v58  ;;  %v439_v60 = vpop.f32.mrb[1].mxu1 }
 0x1cd   :  { %531 = vtanh.f32 %v213_v59 }
 0x1d7   :  { %v532_v61 = vpop.eup %531 }
 0x1d8   :  { %473 = vmatmul.mubr.f32.vlgmr.msra.gmra.mrb[2].mxu0 %v532_v61 }
 0x2ab   :  { %v306_v63 = vpop.f32.mrb[2].mxu0 }
 0x2ac   :  { %v307_v0 = vadd.f32 %v363_v62, %v306_v63  ;;  %v474_v2 = vpop.f32.mrb[3].mxu0 }
 0x2ae   :  { %v311_v1 = vsel %vm310_vm2, %v307_v0, -inf }
 0x2af   :  { %312 = vmax.xlane.f32.xlu0 %v311_v1 }
 0x33c   :  { %v313_v3 = vpop.xlane.xlu0 %312 }
 0x33d   :  { %v314_v4 = vsub.f32 %v307_v0, %v313_v3 }
 0x33f   :  { %v315_v5 = vmul.f32 1.442695, %v314_v4 }
 0x341   :  { %533 = vpow2.f32 %v315_v5 }
 0x34b   :  { %v534_v6 = vpop.eup %533 }
 0x34c   :  { %v317_v7 = vsel %vm310_vm2, %v534_v6, 0.0 }
 0x34d   :  { %318 = vadd.xlane.f32.xlu0 %v317_v7 }
 0x363   :  { %338 = vrot.lane.b32.xlu0 %v307_v0, %s591_s4 }
 0x3da   :  { %v319_v8 = vpop.xlane.xlu0 %318 }
 0x3db   :  { %535 = vrcp.f32 %v319_v8 }
 0x3dc   :  { %537 = vlog2.f32 %v319_v8 }
 0x3de   :  { %v339_v18 = vpop.permute.xlu0 %338 }
 0x3e5   :  { %v536_v9 = vpop.eup %535 }
 0x3e6   :  { %v538_v10 = vpop.eup %537  ;;  %v321_v11 = vmul.f32 %v536_v9, %v534_v6 }
 0x3e7   :  { %v323_v12 = vmul.f32 0.6931472, %v538_v10 }
 0x3e8   :  { %330 = vst.msk [vmem:[#allocation5] sm:$0xff] %vm310_vm2, %v321_v11 }
 0x3e9   :  { %v324_v13 = vsub.f32 %v314_v4, %v323_v12 }
 0x3eb   :  { %v325_v14 = vmul.f32 %v324_v13, %v321_v11 }
 0x3ed   :  { %v326_v15 = vsel %vm310_vm2, %v325_v14, 0.0 }
 0x3ee   :  { %327 = vadd.xlane.f32.xlu1 %v326_v15 }
 0x3ff   :  { %332 = vrot.lane.b32.xlu1 %v324_v13, %s591_s4 }
 0x47b   :  { %v328_v16 = vpop.xlane.xlu1 %327 }
 0x47c   :  { %v329_v19 = vsub.f32 0.0, %v328_v16 }
 0x47f   :  { %v333_v17 = vpop.permute.xlu1 %332 }
 0x480   :  { %336 = vst.msk [vmem:[#allocation5] sm:$0xff] %vm335_vm3, %v333_v17 }
 0x481   :  { %342 = vst.msk [vmem:[#allocation5] sm:$0xff] %vm341_vm4, %v339_v18 }
 0x482   :  { %344 = vst.msk [vmem:[#allocation5] sm:$0xff] %vm343_vm5, %v329_v19 }
 0x483   :  { %572 = shalt.err (!%p569_p12)
}
 0x484   :  { %s573_s10 = scalar_lea.hbm %s795_s7, 128 }
 0x485   :  { %p574_p13 = scmp.ne.s32.totalorder %s795_s7, %s573_s10  ;;  %p577_p0 = scmp.lt.u32.totalorder %s573_s10, %s795_s7 }
 0x487   :  { %p579_p1 = pnand %p577_p0, %p574_p13 }
 0x489   :  { %582 = shalt.err (!%p579_p1)
}
 0x48a   :  { %354 = dma.vmem_to_hbm [thread:$0]  %s352_s6, 128, %s795_s7, [#allocation4]  }
 0x48b   :  { %585 = dma.done.wait [#allocation4], 128  }
 0x48c   :  { %586 = vsyncadd [#allocation4], 4294967168 }
 0x48d   :  { %358 = vsyncpa [#allocation3], 1 }
 0x48e   :  { %359 = vsyncpa [#allocation4], 1 }

</bundles_post_ra>
